<compile_context>
chip_gen: v7x
topology: tpu7x:2x2x1
jax: 0.10.0
libtpu: 0.0.40
codegen_flags: <defaults>
</compile_context>

<pallas_src>
import jax
import jax.numpy as jnp
import numpy as np
from jax.experimental import pallas as pl
from jax.experimental.pallas import tpu as pltpu


def _node_bias_kernel(c_ref, map_ref, label_ref, out_ref):
    # c_ref     : (3,) f32 in SMEM   -- folded coefficients [c0, c1, c2]
    # map_ref   : (TL, L) tile, native dtype (cast in-kernel)
    # label_ref : (TL, L) tile, native int dtype (cast in-kernel)
    # out_ref   : (TL, L) tile, out_dtype (f32 or bf16)
    c0 = c_ref[0]
    c1 = c_ref[1]
    c2 = c_ref[2]
    m = map_ref[...].astype(jnp.float32)
    lab = label_ref[...].astype(jnp.float32)
    out_ref[...] = (m * c0 + lab * c1 + c2).astype(out_ref.dtype)


def _round8_down(x):
    return max(8, (int(x) // 8) * 8)


def _vmem_budget_and_limit():
    """(tile budget for double-buffered in+out, vmem_limit_bytes) per chip gen."""
    vmem_cap = 64 * 1024 * 1024  # conservative fallback (v7x-sized)
    try:
        info = pltpu.get_tpu_info()
        vmem_cap = int(getattr(info, "vmem_capacity_bytes", vmem_cap))
    except Exception:
        pass
    if vmem_cap >= 96 * 1024 * 1024:
        # v5e / v6e: 128 MiB physical VMEM -> big tiles, generous scoped limit
        return 48 * 1024 * 1024, 96 * 1024 * 1024
    # v7x: 64 MiB physical VMEM per TC -> keep headroom for double-buffering
    return 36 * 1024 * 1024, 48 * 1024 * 1024


def _pick_row_tile(n_rows, bytes_per_row, vmem_budget, min_steps=16):
    """Rows per grid step for a pure streaming kernel.

    - double-buffered VMEM use per step is ~2 * TL * bytes_per_row <= vmem_budget
    - target ~vmem_budget/4 bytes of HBM traffic per step (amortize the ~0.35 us
      per-step pipeline overhead)
    - keep >= min_steps grid steps when the array is big enough (so both v7x
      TensorCores get a pipelined multi-step stream), but never shrink a step
      below ~1 MiB.
    TL is always a multiple of 8 (BlockSpec (8,128) rule; columns are full width).
    """
    rows8 = -(-int(n_rows) // 8) * 8
    bpr = max(int(bytes_per_row), 1)
    cap = _round8_down(vmem_budget // (2 * bpr))                      # VMEM cap
    target = _round8_down(max(2 << 20, vmem_budget // 4) // bpr)      # bytes/step target
    floor = _round8_down((1 << 20) // bpr)                            # ~1 MiB/step floor
    tl = min(cap, target, rows8)
    tl = max(8, tl)
    steps = -(-int(n_rows) // tl)
    if steps < min_steps:
        tl_for_steps = _round8_down(-(-rows8 // min_steps))
        tl = min(rows8, cap, max(tl_for_steps, min(floor, target)))
    return max(8, tl)


def node_bias_encoding_pallas(int_chain_label, dist_map, contact_map,
                              w1, b1, w2, b2, _type='contact',
                              out_dtype=jnp.float32,
                              small_l_threshold=256, row_tile=None):
    """w1: (H, 2) hidden_linear.weight, b1: (H,) hidden_linear.bias,
       w2: (H,)  self_linear.weight,   b2: scalar self_linear.bias.

    out_dtype: jnp.float32 (PyTorch-matching, default) or jnp.bfloat16 when the
               downstream attention-bias consumer is bf16 (saves write traffic).
    row_tile:  optional explicit row tile (multiple of 8), mainly for testing.
    """
    map_ = jnp.asarray(dist_map if _type == 'distance' else contact_map)
    label = jnp.asarray(int_chain_label)   # keep native int dtype; cast in-kernel

    # Fold the two Linears into 3 scalars (exact up to FP reassociation).
    w1f = jnp.asarray(w1, jnp.float32)             # (H, 2)
    b1f = jnp.asarray(b1, jnp.float32)             # (H,)
    w2f = jnp.asarray(w2, jnp.float32).reshape(-1) # (H,)
    b2f = jnp.asarray(b2, jnp.float32).reshape(()) # scalar
    c0 = jnp.dot(w2f, w1f[:, 0])
    c1 = jnp.dot(w2f, w1f[:, 1])
    c2 = jnp.dot(w2f, b1f) + b2f

    L1, L2 = map_.shape

    # Small-L fast path: pallas_call launch cost dominates; let XLA fuse it.
    if row_tile is None and L1 < small_l_threshold and L2 < small_l_threshold:
        out = (map_.astype(jnp.float32) * c0
               + label.astype(jnp.float32) * c1 + c2).astype(out_dtype)
        return out[None, None, :, :]

    coeffs = jnp.stack([c0, c1, c2]).astype(jnp.float32)   # (3,)

    bytes_per_row = L2 * (map_.dtype.itemsize + label.dtype.itemsize
                          + np.dtype(out_dtype).itemsize)
    vmem_budget, vmem_limit = _vmem_budget_and_limit()
    TL = int(row_tile) if row_tile is not None else _pick_row_tile(
        L1, bytes_per_row, vmem_budget)

    # cdiv grid: no wrapper-side padding, no output slice; Pallas masks the
    # ragged last row-block on store (TL is a multiple of 8, columns are full).
    grid = (pl.cdiv(L1, TL),)

    out = pl.pallas_call(
        _node_bias_kernel,
        out_shape=jax.ShapeDtypeStruct((L1, L2), out_dtype),
        grid=grid,
        in_specs=[
            pl.BlockSpec(memory_space=pltpu.MemorySpace.SMEM),   # folded coeffs (3,)
            pl.BlockSpec((TL, L2), lambda i: (i, 0)),            # map tile
            pl.BlockSpec((TL, L2), lambda i: (i, 0)),            # label tile
        ],
        out_specs=pl.BlockSpec((TL, L2), lambda i: (i, 0)),
        compiler_params=pltpu.CompilerParams(
            dimension_semantics=("parallel",),
            vmem_limit_bytes=vmem_limit,
        ),
    )(coeffs, map_, label)

    # .unsqueeze(0).unsqueeze(0)
    return out[None, None, :, :]


def _reference(int_chain_label, dist_map, contact_map, w1, b1, w2, b2, _type='contact'):
    map_ = (dist_map if _type == 'distance' else contact_map).astype(jnp.float32)
    lab = int_chain_label.astype(jnp.float32)
    x = jnp.stack((map_, lab), axis=-1)                 # (L, L, 2)
    x = x @ jnp.asarray(w1, jnp.float32).T + jnp.asarray(b1, jnp.float32)
    x = x @ jnp.asarray(w2, jnp.float32).reshape(-1, 1) + jnp.asarray(b2, jnp.float32)
    return x[..., 0][None, None, :, :]


if __name__ == "__main__":
    H = 32            # bias_h_size

    key = jax.random.PRNGKey(0)
    k1, k2, k4, k5, k6, k7 = jax.random.split(key, 6)

    # deterministic parameter init (PyTorch-Linear-style uniform bounds)
    bound1 = 1.0 / np.sqrt(2.0)
    w1 = jax.random.uniform(k4, (H, 2), jnp.float32, -bound1, bound1)   # hidden_linear.weight
    b1 = jax.random.uniform(k5, (H,), jnp.float32, -bound1, bound1)     # hidden_linear.bias
    bound2 = 1.0 / np.sqrt(H)
    w2 = jax.random.uniform(k6, (H,), jnp.float32, -bound2, bound2)     # self_linear.weight
    b2 = jax.random.uniform(k7, (), jnp.float32, -bound2, bound2)       # self_linear.bias

    def make_inputs(L, k):
        ka, kb, kc = jax.random.split(k, 3)
        lab = jax.random.randint(ka, (L, L), 0, 2, dtype=jnp.int32)
        dmap = jax.random.uniform(kb, (L, L), jnp.float32, 0.0, 20.0)
        cmap = (jax.random.uniform(kc, (L, L), jnp.float32) > 0.5).astype(jnp.float32)
        return lab, dmap, cmap

    # 1) small L, Pallas path forced (threshold=0), 'contact' mode
    lab, dmap, cmap = make_inputs(16, k1)
    out = node_bias_encoding_pallas(lab, dmap, cmap, w1, b1, w2, b2,
                                    _type='contact', small_l_threshold=0)
    out = jax.block_until_ready(out)
    ref = _reference(lab, dmap, cmap, w1, b1, w2, b2, _type='contact')
    assert out.shape == (1, 1, 16, 16), out.shape
    np.testing.assert_allclose(np.asarray(out), np.asarray(ref), rtol=1e-5, atol=1e-5)

    # 'distance' mode (exercises the other map)
    out_d = node_bias_encoding_pallas(lab, dmap, cmap, w1, b1, w2, b2,
                                      _type='distance', small_l_threshold=0)
    jax.block_until_ready(out_d)
    ref_d = _reference(lab, dmap, cmap, w1, b1, w2, b2, _type='distance')
    np.testing.assert_allclose(np.asarray(out_d), np.asarray(ref_d), rtol=1e-5, atol=1e-5)

    # 2) ragged L (L % 8 != 0, L % TL != 0): cdiv grid, masked last row-block
    lab_r, dmap_r, cmap_r = make_inputs(140, k2)
    out_r = node_bias_encoding_pallas(lab_r, dmap_r, cmap_r, w1, b1, w2, b2,
                                      _type='contact', row_tile=64)
    jax.block_until_ready(out_r)
    ref_r = _reference(lab_r, dmap_r, cmap_r, w1, b1, w2, b2, _type='contact')
    assert out_r.shape == (1, 1, 140, 140), out_r.shape
    np.testing.assert_allclose(np.asarray(out_r), np.asarray(ref_r), rtol=1e-5, atol=1e-5)

    # 3) default dispatch: small-L fast path (pure jnp, XLA-fused)
    out_f = node_bias_encoding_pallas(lab, dmap, cmap, w1, b1, w2, b2, _type='contact')
    jax.block_until_ready(out_f)
    np.testing.assert_allclose(np.asarray(out_f), np.asarray(ref), rtol=1e-5, atol=1e-5)

    # 4) optional bf16 output path (looser tolerance; write traffic 4->2 B/elem)
    out_bf = node_bias_encoding_pallas(lab, dmap, cmap, w1, b1, w2, b2,
                                       _type='contact', small_l_threshold=0,
                                       out_dtype=jnp.bfloat16)
    jax.block_until_ready(out_bf)
    np.testing.assert_allclose(np.asarray(out_bf.astype(jnp.float32)), np.asarray(ref),
                               rtol=2e-2, atol=2e-2)

    print("KERNEL_OK")
</pallas_src>

<mosaic_0001>
module attributes {stable_mosaic.version = 11 : i64} {
  func.func @_node_bias_kernel(%arg0: i32, %arg1: memref<3xf32, #tpu.memory_space<smem>>, %arg2: memref<16x16xf32, #tpu.memory_space<vmem>>, %arg3: memref<16x16xi32, #tpu.memory_space<vmem>>, %arg4: memref<16x16xf32, #tpu.memory_space<vmem>>) attributes {dimension_semantics = [#tpu.dimension_semantics<parallel>], iteration_bounds = array<i64: 1>, scalar_prefetch = 0 : i64, scratch_operands = 0 : i64, tpu.core_type = #tpu.core_type<tc>, window_params = [{transform_indices = @transform_0, window_bounds = array<i64: 3>}, {transform_indices = @transform_1, window_bounds = array<i64: 16, 16>}, {transform_indices = @transform_2, window_bounds = array<i64: 16, 16>}, {transform_indices = @transform_3, window_bounds = array<i64: 16, 16>}]} {
    %c0 = arith.constant 0 : index
    %0 = memref.load %arg1[%c0] : memref<3xf32, #tpu.memory_space<smem>>
    %c1 = arith.constant 1 : index
    %1 = memref.load %arg1[%c1] : memref<3xf32, #tpu.memory_space<smem>>
    %c2 = arith.constant 2 : index
    %2 = memref.load %arg1[%c2] : memref<3xf32, #tpu.memory_space<smem>>
    %c0_0 = arith.constant 0 : index
    %c0_1 = arith.constant 0 : index
    %3 = vector.load %arg2[%c0_0, %c0_1] : memref<16x16xf32, #tpu.memory_space<vmem>>, vector<16x16xf32>
    %c0_2 = arith.constant 0 : index
    %c0_3 = arith.constant 0 : index
    %4 = vector.load %arg3[%c0_2, %c0_3] : memref<16x16xi32, #tpu.memory_space<vmem>>, vector<16x16xi32>
    %5 = arith.sitofp %4 : vector<16x16xi32> to vector<16x16xf32>
    %6 = vector.broadcast %0 : f32 to vector<16x16xf32>
    %7 = arith.mulf %3, %6 : vector<16x16xf32>
    %8 = vector.broadcast %1 : f32 to vector<16x16xf32>
    %9 = arith.mulf %5, %8 : vector<16x16xf32>
    %10 = arith.addf %7, %9 : vector<16x16xf32>
    %11 = vector.broadcast %2 : f32 to vector<16x16xf32>
    %12 = arith.addf %10, %11 : vector<16x16xf32>
    %c0_4 = arith.constant 0 : index
    %c0_5 = arith.constant 0 : index
    %13 = vector.load %arg4[%c0_4, %c0_5] : memref<16x16xf32, #tpu.memory_space<vmem>>, vector<16x16xf32>
    tpu.vector_store %arg4[%c0_4, %c0_5], %12 {strides = array<i32>} : memref<16x16xf32, #tpu.memory_space<vmem>>, vector<16x16xf32>,
    return
  }
  func.func @transform_0(%arg0: i32) -> i32 {
    %c0_i32 = arith.constant 0 : i32
    %c0_i32_0 = arith.constant 0 : i32
    return %c0_i32 : i32
  }
  func.func @transform_1(%arg0: i32) -> (i32, i32) {
    %c0_i32 = arith.constant 0 : i32
    %c0_i32_0 = arith.constant 0 : i32
    return %arg0, %c0_i32 : i32, i32
  }
  func.func @transform_2(%arg0: i32) -> (i32, i32) {
    %c0_i32 = arith.constant 0 : i32
    %c0_i32_0 = arith.constant 0 : i32
    return %arg0, %c0_i32 : i32, i32
  }
  func.func @transform_3(%arg0: i32) -> (i32, i32) {
    %c0_i32 = arith.constant 0 : i32
    %c0_i32_0 = arith.constant 0 : i32
    return %arg0, %c0_i32 : i32, i32
  }
}

</mosaic_0001>

<bundles_post_ra>
// kernel: tpu_custom_call.1
= control target key start
LH: loop header
LB: loop body
LE: loop exit
PB: predicated region body
PF: predicated region fallthrough
CT: control target
= control target key end

     0   :  { %8 = vsyncpa [#allocation5], 0  ;;  %s271_s0 = inlined_call_operand.hbm [shape: f32[3], index: 0, kind: input, shape index: {}]   ;;  %s272_s1 = inlined_call_operand.hbm [shape: f32[16,16], index: 1, kind: input, shape index: {}]   ;;  %s273_s2 = inlined_call_operand.hbm [shape: s32[16,16], index: 2, kind: input, shape index: {}]   ;;  %s274_s3 = inlined_call_operand.hbm [shape: f32[16,16], index: 3, kind: output, shape index: {}]  }
   0x1   :  { %9 = vsyncpa [#allocation3], 0 }
   0x2   :  { %10 = vsyncpa [#allocation8], 0 }
   0x3   :  { %11 = vsyncpa [#allocation4], 0  ;;  %s104_s14 = scalar_lea.hbm %s271_s0, 16 }
   0x4   :  { %p105_p0 = scmp.ne.s32.totalorder %s271_s0, %s104_s14  ;;  %p108_p1 = scmp.lt.u32.totalorder %s104_s14, %s271_s0 }
   0x6   :  { %p110_p2 = pnand %p108_p1, %p105_p0 }
   0x8   :  { %113 = shalt.err (!%p110_p2)
}
   0x9   :  { %s188_s19 = smov [#allocation2]   ;;  %s189_s22 = smov [#allocation6]  }
   0xa   :  { %19 = dma.hbm_to_smem %s271_s0, 16, %s188_s19, [#allocation5]  }
   0xb   :  { %s25_s23 = sshll.u32 %s189_s22, 4  ;;  %s114_s26 = scalar_lea.hbm %s272_s1, 256  ;;  %s26_s23 = int_to_ptr.vmem [resolvable:$true] %s25_s23 }
   0xc   :  { %p115_p3 = scmp.ne.s32.totalorder %s272_s1, %s114_s26  ;;  %p118_p4 = scmp.lt.u32.totalorder %s114_s26, %s272_s1 }
   0xe   :  { %p120_p5 = pnand %p118_p4, %p115_p3 }
  0x10   :  { %123 = shalt.err (!%p120_p5)
}
  0x11   :  { %s124_s4 = scalar_lea.vmem %s26_s23, 256  ;;  %p129_p7 = scmp.lt.s32.totalorder %s26_s23, %s26_s23 }
  0x12   :  { %p125_p6 = scmp.ne.s32.totalorder %s26_s23, %s124_s4  ;;  %p130_p8 = scmp.lt.s32.totalorder %s124_s4, %s124_s4 }
  0x14   :  { %p131_p9 = por %p130_p8, %p129_p7 }
  0x16   :  { %p132_p10 = pnand %p131_p9, %p125_p6 }
  0x18   :  { %135 = shalt.err (!%p132_p10)
}
  0x19   :  { %s190_s0 = smov 128   ;;  %s191_s5 = smov 8  }
  0x1a   :  { %31 = dma.hbm_to_vmem [thread:$0]  %s272_s1, 256, %s26_s23, [#allocation3], %s190_s0, %s190_s0, %s191_s5  }
  0x1b   :  { %s192_s8 = smov [#allocation7]   ;;  %s136_s12 = scalar_lea.hbm %s273_s2, 256 }
  0x1c   :  { %s37_s9 = sshll.u32 %s192_s8, 4  ;;  %p137_p11 = scmp.ne.s32.totalorder %s273_s2, %s136_s12  ;;  %s38_s9 = int_to_ptr.vmem [resolvable:$true] %s37_s9 }
  0x1d   :  { %p140_p12 = scmp.lt.u32.totalorder %s136_s12, %s273_s2 }
  0x1f   :  { %p142_p13 = pnand %p140_p12, %p137_p11 }
  0x21   :  { %145 = shalt.err (!%p142_p13)
}
  0x22   :  { %s146_s17 = scalar_lea.vmem %s38_s9, 256  ;;  %p151_p1 = scmp.lt.s32.totalorder %s38_s9, %s38_s9 }
  0x23   :  { %p147_p0 = scmp.ne.s32.totalorder %s38_s9, %s146_s17  ;;  %p152_p2 = scmp.lt.s32.totalorder %s146_s17, %s146_s17 }
  0x25   :  { %p153_p3 = por %p152_p2, %p151_p1 }
  0x27   :  { %p154_p4 = pnand %p153_p3, %p147_p0 }
  0x29   :  { %157 = shalt.err (!%p154_p4)
}
  0x2a   :  { %43 = dma.hbm_to_vmem [thread:$0]  %s273_s2, 256, %s38_s9, [#allocation8], %s190_s0, %s190_s0, %s191_s5  }
  0x2b   :  { %180 = dma.done.wait [#allocation5], 16  }
  0x2c   :  { %181 = vsyncadd [#allocation5], 4294967280 }
  0x2d   :  { %182 = dma.done.wait [#allocation3], 256  }
  0x2e   :  { %183 = vsyncadd [#allocation3], 4294967040 }
  0x2f   :  { %184 = dma.done.wait [#allocation8], 256  }
  0x30   :  { %185 = vsyncadd [#allocation8], 4294967040 }
  0x31   :  { %53 = sfence }
  0x32   :  { %s54_s19 = sld [smem:[#allocation2]]  ;;  %s96_s20 = sld [smem:[#allocation2 + $0x1]]  ;;  %v59_v0 = vld [vmem:[#allocation7] sm:$0xff]  ;;  %v60_v1 = vld [vmem:[#allocation7 + $0x8] sm:$0xff]  ;;  %v57_v3 = vld [vmem:[#allocation6] sm:$0xff]  ;;  %vm74_vm0 = vcmask 130048  }
  0x33   :  { %s97_s21 = sld [smem:[#allocation2 + $0x2]]  ;;  %v61_v2 = vcvt.s32.f32 %v59_v0  ;;  %v58_v4 = vld [vmem:[#allocation6 + $0x8] sm:$0xff]  ;;  %v62_v5 = vcvt.s32.f32 %v60_v1  ;;  %s193_s2 = smov [#allocation9]  }
  0x34   :  { %s82_s22 = sshll.u32 %s193_s2, 4  ;;  %s83_s22 = int_to_ptr.vmem [resolvable:$true] %s82_s22 }
  0x35   :  { %s158_s23 = scalar_lea.vmem %s83_s22, 256  ;;  %p163_p6 = scmp.lt.s32.totalorder %s83_s22, %s83_s22 }
  0x36   :  { %p159_p5 = scmp.ne.s32.totalorder %s83_s22, %s158_s23  ;;  %p164_p7 = scmp.lt.s32.totalorder %s158_s23, %s158_s23 }
  0x38   :  { %v63_v6 = vstv %s54_s19  ;;  %v66_v7 = vstv %s96_s20  ;;  %p165_p8 = por %p164_p7, %p163_p6 }
  0x39   :  { %v64_v8 = vmul.f32 %v63_v6, %v57_v3  ;;  %v67_v9 = vmul.f32 %v66_v7, %v61_v2  ;;  %v65_v10 = vmul.f32 %v63_v6, %v58_v4  ;;  %v71_v11 = vstv %s97_s21 }
  0x3a   :  { %v68_v12 = vmul.f32 %v66_v7, %v62_v5  ;;  %p166_p9 = pnand %p165_p8, %p159_p5 }
  0x3b   :  { %v69_v13 = vadd.f32 %v67_v9, %v64_v8 }
  0x3c   :  { %v70_v14 = vadd.f32 %v68_v12, %v65_v10 }
  0x3d   :  { %v72_v15 = vadd.f32 %v71_v11, %v69_v13 }
  0x3e   :  { %v73_v16 = vadd.f32 %v71_v11, %v70_v14 }
  0x3f   :  { %75 = vst.msk [vmem:[#allocation9] sm:$0xff] %vm74_vm0, %v72_v15 }
  0x40   :  { %76 = vst.msk [vmem:[#allocation9 + $0x8] sm:$0xff] %vm74_vm0, %v73_v16 }
  0x41   :  { %169 = shalt.err (!%p166_p9)
}
  0x42   :  { %s170_s26 = scalar_lea.hbm %s274_s3, 256 }
  0x43   :  { %p171_p10 = scmp.ne.s32.totalorder %s274_s3, %s170_s26  ;;  %p174_p11 = scmp.lt.u32.totalorder %s170_s26, %s274_s3 }
  0x45   :  { %p176_p12 = pnand %p174_p11, %p171_p10 }
  0x47   :  { %179 = shalt.err (!%p176_p12)
}
  0x48   :  { %88 = dma.vmem_to_hbm [thread:$0]  %s83_s22, 256, %s274_s3, [#allocation4], %s190_s0, %s190_s0, %s191_s5  }
  0x49   :  { %186 = dma.done.wait [#allocation4], 256  }
  0x4a   :  { %187 = vsyncadd [#allocation4], 4294967040 }
  0x4b   :  { %92 = vsyncpa [#allocation3], 1 }
  0x4c   :  { %93 = vsyncpa [#allocation8], 1 }
  0x4d   :  { %94 = vsyncpa [#allocation4], 1 }
  0x4e   :  { %95 = vsyncpa [#allocation5], 1 }

</bundles_post_ra>
